<compile_context>
chip_gen: v7x
topology: tpu7x:2x2x1
jax: 0.10.0
libtpu: 0.0.40
codegen_flags: <defaults>
</compile_context>

<pallas_src>
import jax
import jax.numpy as jnp
from jax.experimental import pallas as pl
from jax.experimental.pallas import tpu as pltpu

_LANE = 128   # output channels are rounded up to this (unmasked, lane-dense vst)
_SUB = 8      # sublane width; halo-scratch padded width is a multiple of this


def _round_up(x, m):
    return (x + m - 1) // m * m


def _pad_channels(a, c_to, axis=-1):
    c = a.shape[axis]
    if c == c_to:
        return a
    pad = [(0, 0)] * a.ndim
    pad[axis] = (0, c_to - c)
    return jnp.pad(a, pad)


def _vmem_limit_bytes():
    # Per-generation VMEM budget: ~3/4 of physical, capped at 96 MiB
    # (-> ~96 MiB on v5e/v6e's 128 MiB, ~48 MiB on v7x's 64 MiB).
    cap = 128 * 1024 * 1024
    try:
        cap = int(pltpu.get_tpu_info().vmem_capacity_bytes)
    except Exception:
        pass
    return int(max(min(cap * 3 // 4, 96 * 1024 * 1024), 16 * 1024 * 1024))


def _choose_tile_h(N, H, W, cout, min_steps=8, max_acc_bytes=4 * 1024 * 1024):
    # Largest H-tile dividing H that keeps the f32 accumulator modest and gives
    # at least `min_steps` grid steps per call (pipelining / megacore).
    divs = [d for d in range(1, H + 1) if H % d == 0]
    fitting = [d for d in divs if d * W * cout * 4 <= max_acc_bytes] or [1]
    good = [d for d in fitting if N * (H // d) >= min_steps]
    return max(good) if good else max(fitting)


# ----------------------------------------------------------------------------
# Fused 3x3 conv kernel:  out = conv(maybe_relu(x)) + b
#                             [+ conv(maybe_relu(x2)) + b2]   (dual-conv fusion)
#                             [+ residual_0 + residual_1 ...] (fused adds)
# kh-grouped accumulation: 3 matmuls of (TH*W, 3*Cin) x (3*Cin, Cout) into a
# shared f32 VMEM accumulator; dual paths run strictly sequentially.
# ----------------------------------------------------------------------------
def _make_conv_kernel(H, W, TH, Cout, *, cin1, relu1, dual, cin2, relu2,
                      res_channels):
    n_res = len(res_channels)

    def kernel(*refs):
        idx = 0
        x_ref, w_ref, b_ref = refs[idx], refs[idx + 1], refs[idx + 2]
        idx += 3
        if dual:
            x2_ref, w2_ref, b2_ref = refs[idx], refs[idx + 1], refs[idx + 2]
            idx += 3
        res_refs = refs[idx:idx + n_res]
        idx += n_res
        o_ref = refs[idx]
        idx += 1
        xpad1_ref = refs[idx]
        idx += 1
        if dual:
            xpad2_ref = refs[idx]
            idx += 1
        acc_ref = refs[idx]

        i = pl.program_id(1)

        # Once per batch (first H-tile): ReLU + cast + zero halo into a
        # persistent, sublane-aligned VMEM scratch (hoisted out of the per-tile
        # body; the scratch is reused by all H-tiles of this batch).
        def fill(src_ref, pad_ref, do_relu):
            x = src_ref[0]                               # (H, W, Cin)
            if do_relu:
                x = jnp.maximum(x, 0)
            x = x.astype(pad_ref.dtype)
            pad_ref[...] = jnp.zeros_like(pad_ref)       # halo + W tail stay 0
            pad_ref[pl.ds(1, H), pl.ds(1, W), :] = x     # interior

        @pl.when(i == 0)
        def _():
            fill(x_ref, xpad1_ref, relu1)
            if dual:
                fill(x2_ref, xpad2_ref, relu2)

        r0 = i * TH                                      # first output row of tile

        def accum(pad_ref, wmat_ref, cin, first):
            for kh in range(3):
                # slab rows r0+kh .. r0+kh+TH-1 of the padded image
                slab = pad_ref[pl.ds(r0 + kh, TH)]       # (TH, Wp, cin)
                taps = jnp.concatenate(
                    [slab[:, kw:kw + W, :] for kw in range(3)], axis=-1)
                operand = taps.reshape(TH * W, 3 * cin)  # leading-dim merge only
                contrib = jnp.dot(operand, wmat_ref[kh],
                                  preferred_element_type=jnp.float32)
                if first and kh == 0:
                    acc_ref[...] = contrib
                else:
                    acc_ref[...] += contrib

        accum(xpad1_ref, w_ref, cin1, True)
        if dual:
            accum(xpad2_ref, w2_ref, cin2, False)        # sequential, same acc

        y = acc_ref[...] + b_ref[...]                    # fused bias (f32)
        if dual:
            y = y + b2_ref[...]
        y = y.reshape(TH, W, Cout)
        for r_ref, rc in zip(res_refs, res_channels):
            rv = r_ref[0].astype(jnp.float32)
            if rc < Cout:                                # pad lanes in-kernel
                rv = jnp.concatenate(
                    [rv, jnp.zeros((TH, W, Cout - rc), jnp.float32)], axis=-1)
            y = y + rv                                   # fused residual adds
        o_ref[0] = y.astype(o_ref.dtype)                 # (W, 128k): unmasked vst

    return kernel


def _fused_conv3x3(x, w_hwio, b, *, relu_in=False, residuals=(), second=None,
                   compute_dtype=jnp.float32, out_dtype=jnp.float32):
    """One fused 3x3/stride-1/pad-1 conv as a single pallas_call (see header)."""
    N, H, W, Cin = x.shape
    KH, KW, wc_in, Cout = w_hwio.shape
    assert (KH, KW) == (3, 3) and wc_in == Cin
    assert Cout % _LANE == 0, "pad Cout to a multiple of 128 for lane-dense stores"

    TH = _choose_tile_h(N, H, W, Cout)
    n_h = H // TH
    Wp = _round_up(W + 2, _SUB)

    # Pre-cast weights in the wrapper (no per-step cast); per-kh matmul operands.
    w3 = w_hwio.reshape(3, 3 * Cin, Cout).astype(compute_dtype)
    b_row = b.reshape(1, Cout).astype(jnp.float32)

    inputs = [x, w3, b_row]
    in_specs = [
        # TODO(synk): at production sizes switch to a halo-overlapping manual
        # DMA fetch; here the per-batch image is resident across the H-tiles.
        pl.BlockSpec((1, H, W, Cin), lambda n, i: (n, 0, 0, 0)),
        pl.BlockSpec((3, 3 * Cin, Cout), lambda n, i: (0, 0, 0)),
        pl.BlockSpec((1, Cout), lambda n, i: (0, 0)),
    ]
    scratch = [pltpu.VMEM((H + 2, Wp, Cin), compute_dtype)]
    flops = 2 * N * H * W * 9 * Cin * Cout
    bytes_accessed = (x.size * x.dtype.itemsize + w3.size * w3.dtype.itemsize
                      + b_row.size * 4
                      + N * H * W * Cout * jnp.dtype(out_dtype).itemsize)

    dual = second is not None
    cin2 = relu2 = None
    if dual:
        x2, w2_hwio, b2, relu2 = second
        assert x2.shape[:3] == (N, H, W)
        cin2 = x2.shape[-1]
        w23 = w2_hwio.reshape(3, 3 * cin2, Cout).astype(compute_dtype)
        b2_row = b2.reshape(1, Cout).astype(jnp.float32)
        inputs += [x2, w23, b2_row]
        in_specs += [
            pl.BlockSpec((1, H, W, cin2), lambda n, i: (n, 0, 0, 0)),
            pl.BlockSpec((3, 3 * cin2, Cout), lambda n, i: (0, 0, 0)),
            pl.BlockSpec((1, Cout), lambda n, i: (0, 0)),
        ]
        scratch.append(pltpu.VMEM((H + 2, Wp, cin2), compute_dtype))
        flops += 2 * N * H * W * 9 * cin2 * Cout
        bytes_accessed += (x2.size * x2.dtype.itemsize
                           + w23.size * w23.dtype.itemsize + b2_row.size * 4)

    residuals = tuple(residuals)
    res_channels = []
    for r in residuals:
        assert r.shape[:3] == (N, H, W) and r.shape[-1] <= Cout
        res_channels.append(r.shape[-1])
        inputs.append(r)
        in_specs.append(
            pl.BlockSpec((1, TH, W, r.shape[-1]), lambda n, i: (n, i, 0, 0)))
        bytes_accessed += r.size * r.dtype.itemsize

    scratch.append(pltpu.VMEM((TH * W, Cout), jnp.float32))  # shared f32 accumulator

    kernel = _make_conv_kernel(H, W, TH, Cout, cin1=Cin, relu1=relu_in, dual=dual,
                               cin2=cin2, relu2=relu2,
                               res_channels=tuple(res_channels))

    return pl.pallas_call(
        kernel,
        out_shape=jax.ShapeDtypeStruct((N, H, W, Cout), out_dtype),
        grid_spec=pltpu.PrefetchScalarGridSpec(
            num_scalar_prefetch=0,
            grid=(N, n_h),
            in_specs=in_specs,
            out_specs=pl.BlockSpec((1, TH, W, Cout), lambda n, i: (n, i, 0, 0)),
            scratch_shapes=scratch,
        ),
        compiler_params=pltpu.CompilerParams(
            # N is independent (megacore-shardable); the H-tile axis must stay
            # sequential because the per-batch halo scratch is filled at i == 0.
            dimension_semantics=("parallel", "arbitrary"),
            vmem_limit_bytes=_vmem_limit_bytes(),
        ),
        cost_estimate=pl.CostEstimate(flops=flops, transcendentals=0,
                                      bytes_accessed=bytes_accessed),
    )(*inputs)


# ----------------------------------------------------------------------------
# Bilinear 2x upsample (PyTorch F.interpolate mode='bilinear', align_corners=False)
# ----------------------------------------------------------------------------
def _bilinear_upsample_matrix(in_size, out_size):
    o = jnp.arange(out_size, dtype=jnp.float32)
    src = jnp.maximum((o + 0.5) * (in_size / out_size) - 0.5, 0.0)
    i0 = jnp.clip(jnp.floor(src).astype(jnp.int32), 0, in_size - 1)
    i1 = jnp.clip(i0 + 1, 0, in_size - 1)
    frac = src - i0.astype(jnp.float32)
    u = jnp.zeros((out_size, in_size), jnp.float32)
    rows = jnp.arange(out_size)
    u = u.at[rows, i0].add(1.0 - frac)
    u = u.at[rows, i1].add(frac)
    return u


def _bilinear_upsample_2d(x, out_h, out_w):
    # x: (N, h, w, C) -> (N, out_h, out_w, C); exact PyTorch align_corners=False.
    _, h, w, _ = x.shape
    uh = _bilinear_upsample_matrix(h, out_h)
    uw = _bilinear_upsample_matrix(w, out_w)
    y = jnp.einsum("Hh,nhwc->nHwc", uh, x)
    return jnp.einsum("Ww,nHwc->nHWc", uw, y)


# ----------------------------------------------------------------------------
# UpsampleBlock forward (Pallas) and pure-JAX reference
# ----------------------------------------------------------------------------
def upsample_block_forward(skip_f, up_f, params, out_c, scale_factor=2,
                           compute_dtype=jnp.float32, interm_dtype=jnp.float32):
    """Pallas forward of UpsampleBlock (NHWC).  On v6e/v7x pass
    compute_dtype=interm_dtype=jnp.bfloat16 for the bf16-MXU / half-HBM path
    (f32 accumulation is kept; expect bf16-level output error)."""
    N, H, W, skip_c = skip_f.shape
    _, h, w, up_c = up_f.shape
    assert h * scale_factor == H and w * scale_factor == W

    up_c_p = _round_up(up_c, _LANE)
    out_c_p = _round_up(out_c, _LANE)

    # Round conv channels up to 128 lanes (zero-padded weights/bias) so every
    # store is lane-dense; padded lanes carry exact zeros end-to-end.
    def pad_w(wt, cin_p, cout_p):
        return _pad_channels(_pad_channels(wt, cin_p, axis=2), cout_p, axis=3)

    sc1_w, sc1_b = pad_w(params["sc1_w"], skip_c, up_c_p), _pad_channels(params["sc1_b"], up_c_p)
    rb1_w1, rb1_b1 = pad_w(params["rb1_w1"], up_c_p, up_c_p), _pad_channels(params["rb1_b1"], up_c_p)
    rb1_w2, rb1_b2 = pad_w(params["rb1_w2"], up_c_p, up_c_p), _pad_channels(params["rb1_b2"], up_c_p)
    rb2_w1, rb2_b1 = pad_w(params["rb2_w1"], up_c_p, out_c_p), _pad_channels(params["rb2_b1"], out_c_p)
    rb2_w2, rb2_b2 = pad_w(params["rb2_w2"], out_c_p, out_c_p), _pad_channels(params["rb2_b2"], out_c_p)
    rb2_wd, rb2_bd = pad_w(params["rb2_wd"], up_c_p, out_c_p), _pad_channels(params["rb2_bd"], out_c_p)

    kw = dict(compute_dtype=compute_dtype, out_dtype=interm_dtype)

    # skip_conv1
    y1 = _fused_conv3x3(skip_f, sc1_w, sc1_b, **kw)
    # skip_conv2 = ResBlock(up_c, up_c): conv1
    t = _fused_conv3x3(y1, rb1_w1, rb1_b1, relu_in=True, **kw)

    # Bilinear 2x upsample of up_f at its TRUE channel count (no HBM zero-pad).
    # TODO(synk): fuse these two small einsums into the consuming kernel (needs
    # a (w, c) minor-dim merge Mosaic doesn't lower cleanly); its add IS fused.
    up2x = _bilinear_upsample_2d(up_f, H, W).astype(interm_dtype)

    # skip_conv2 conv2 + ResBlock skip (y1) + upsample add, fused in one call.
    x = _fused_conv3x3(t, rb1_w2, rb1_b2, relu_in=True,
                       residuals=(y1, up2x), **kw)

    # out_conv = ResBlock(up_c, out_c): conv1
    r1 = _fused_conv3x3(x, rb2_w1, rb2_b1, relu_in=True, **kw)
    # out_conv conv2 + downsample conv, fused as one dual-conv kernel (f32 out).
    out = _fused_conv3x3(r1, rb2_w2, rb2_b2, relu_in=True,
                         second=(x, rb2_wd, rb2_bd, False),
                         compute_dtype=compute_dtype, out_dtype=jnp.float32)

    return out[..., :out_c]


def _conv3x3_ref(x, w, b):
    y = jax.lax.conv_general_dilated(
        x, w, window_strides=(1, 1), padding=((1, 1), (1, 1)),
        dimension_numbers=("NHWC", "HWIO", "NHWC"))
    return y + b


def upsample_block_reference(skip_f, up_f, params):
    N, H, W, _ = skip_f.shape
    relu = lambda a: jnp.maximum(a, 0.0)
    y1 = _conv3x3_ref(skip_f, params["sc1_w"], params["sc1_b"])
    r = _conv3x3_ref(relu(y1), params["rb1_w1"], params["rb1_b1"])
    r = _conv3x3_ref(relu(r), params["rb1_w2"], params["rb1_b2"])
    x = y1 + r + _bilinear_upsample_2d(up_f, H, W)
    r = _conv3x3_ref(relu(x), params["rb2_w1"], params["rb2_b1"])
    r = _conv3x3_ref(relu(r), params["rb2_w2"], params["rb2_b2"])
    xd = _conv3x3_ref(x, params["rb2_wd"], params["rb2_bd"])
    return xd + r


def init_upsample_block_params(key, skip_c, up_c, out_c):
    # PyTorch Conv2d-style uniform init (kernel_size=3, bias=True); deterministic.
    ks = jax.random.split(key, 12)

    def conv_init(kw_, kb_, cin, cout):
        bound = 1.0 / ((cin * 9) ** 0.5)
        wt = jax.random.uniform(kw_, (3, 3, cin, cout), jnp.float32, -bound, bound)
        bt = jax.random.uniform(kb_, (cout,), jnp.float32, -bound, bound)
        return wt, bt

    p = {}
    p["sc1_w"], p["sc1_b"] = conv_init(ks[0], ks[1], skip_c, up_c)
    p["rb1_w1"], p["rb1_b1"] = conv_init(ks[2], ks[3], up_c, up_c)
    p["rb1_w2"], p["rb1_b2"] = conv_init(ks[4], ks[5], up_c, up_c)
    p["rb2_w1"], p["rb2_b1"] = conv_init(ks[6], ks[7], up_c, out_c)
    p["rb2_w2"], p["rb2_b2"] = conv_init(ks[8], ks[9], out_c, out_c)
    p["rb2_wd"], p["rb2_bd"] = conv_init(ks[10], ks[11], up_c, out_c)
    return p


if __name__ == "__main__":
    N, H, W = 2, 16, 16
    skip_c, up_c, out_c = 4, 8, 16
    scale = 2

    key = jax.random.PRNGKey(0)
    k1, k2, k3 = jax.random.split(key, 3)
    skip_f = jax.random.normal(k1, (N, H, W, skip_c), jnp.float32)
    up_f = jax.random.normal(k2, (N, H // scale, W // scale, up_c), jnp.float32)
    params = init_upsample_block_params(k3, skip_c, up_c, out_c)

    out = upsample_block_forward(skip_f, up_f, params, out_c, scale_factor=scale)
    out = jax.block_until_ready(out)

    ref = upsample_block_reference(skip_f, up_f, params)
    assert out.shape == (N, H, W, out_c), out.shape
    max_err = float(jnp.max(jnp.abs(out - ref)))
    assert max_err < 5e-4, f"mismatch: {max_err}"

    print("KERNEL_OK")
</pallas_src>

<mosaic_0001>
module attributes {stable_mosaic.version = 11 : i64} {
  func.func @kernel(%arg0: i32, %arg1: i32, %arg2: memref<1x16x16x4xf32, #tpu.memory_space<vmem>>, %arg3: memref<3x12x128xf32, #tpu.memory_space<vmem>>, %arg4: memref<1x128xf32, #tpu.memory_space<vmem>>, %arg5: memref<1x4x16x128xf32, #tpu.memory_space<vmem>>, %arg6: memref<18x24x4xf32, #tpu.memory_space<vmem>>, %arg7: memref<64x128xf32, #tpu.memory_space<vmem>>) attributes {dimension_semantics = [#tpu.dimension_semantics<parallel>, #tpu.dimension_semantics<arbitrary>], iteration_bounds = array<i64: 2, 4>, scalar_prefetch = 0 : i64, scratch_operands = 2 : i64, tpu.core_type = #tpu.core_type<tc>, window_params = [{transform_indices = @transform_0, window_bounds = array<i64: 1, 16, 16, 4>}, {pipeline_mode = #tpu.pipeline_mode<synchronous>, transform_indices = @transform_1, window_bounds = array<i64: 3, 12, 128>}, {pipeline_mode = #tpu.pipeline_mode<synchronous>, transform_indices = @transform_2, window_bounds = array<i64: 1, 128>}, {transform_indices = @transform_3, window_bounds = array<i64: 1, 4, 16, 128>}]} {
    %c0_i32 = arith.constant 0 : i32
    %0 = arith.cmpi eq, %arg1, %c0_i32 : i32
    %1 = arith.extui %0 : i1 to i32
    %c0_i32_0 = arith.constant 0 : i32
    %2 = arith.cmpi ne, %1, %c0_i32_0 : i32
    scf.if %2 {
      %c0_34 = arith.constant 0 : index
      %c0_35 = arith.constant 0 : index
      %c0_36 = arith.constant 0 : index
      %c0_37 = arith.constant 0 : index
      %52 = vector.load %arg2[%c0_34, %c0_35, %c0_36, %c0_37] : memref<1x16x16x4xf32, #tpu.memory_space<vmem>>, vector<1x16x16x4xf32>
      %53 = vector.shape_cast %52 : vector<1x16x16x4xf32> to vector<16x16x4xf32>
      %cst_38 = arith.constant 0.000000e+00 : f32
      %54 = vector.broadcast %cst_38 : f32 to vector<18x24x4xf32>
      %c0_39 = arith.constant 0 : index
      %c0_40 = arith.constant 0 : index
      %c0_41 = arith.constant 0 : index
      %55 = vector.load %arg6[%c0_39, %c0_40, %c0_41] : memref<18x24x4xf32, #tpu.memory_space<vmem>>, vector<18x24x4xf32>
      tpu.vector_store %arg6[%c0_39, %c0_40, %c0_41], %54 {strides = array<i32>} : memref<18x24x4xf32, #tpu.memory_space<vmem>>, vector<18x24x4xf32>,
      %c1_42 = arith.constant 1 : index
      %c1_43 = arith.constant 1 : index
      %c0_44 = arith.constant 0 : index
      %56 = vector.load %arg6[%c1_42, %c1_43, %c0_44] : memref<18x24x4xf32, #tpu.memory_space<vmem>>, vector<16x16x4xf32>
      tpu.vector_store %arg6[%c1_42, %c1_43, %c0_44], %53 {strides = array<i32>} : memref<18x24x4xf32, #tpu.memory_space<vmem>>, vector<16x16x4xf32>,
    } else {
    }
    %c4_i32 = arith.constant 4 : i32
    %3 = arith.muli %arg1, %c4_i32 : i32
    %c0_i32_1 = arith.constant 0 : i32
    %4 = arith.addi %3, %c0_i32_1 : i32
    %5 = arith.index_cast %4 : i32 to index
    %c0 = arith.constant 0 : index
    %c0_2 = arith.constant 0 : index
    %6 = vector.load %arg6[%5, %c0, %c0_2] : memref<18x24x4xf32, #tpu.memory_space<vmem>>, vector<4x24x4xf32>
    %7 = vector.extract_strided_slice %6 {offsets = [0, 0, 0], sizes = [4, 16, 4], strides = [1, 1, 1]} : vector<4x24x4xf32> to vector<4x16x4xf32>
    %8 = vector.extract_strided_slice %6 {offsets = [0, 1, 0], sizes = [4, 16, 4], strides = [1, 1, 1]} : vector<4x24x4xf32> to vector<4x16x4xf32>
    %9 = vector.extract_strided_slice %6 {offsets = [0, 2, 0], sizes = [4, 16, 4], strides = [1, 1, 1]} : vector<4x24x4xf32> to vector<4x16x4xf32>
    %10 = tpu.concatenate %7, %8, %9 in 2 : vector<4x16x4xf32>, vector<4x16x4xf32>, vector<4x16x4xf32> -> vector<4x16x12xf32>
    %11 = vector.shape_cast %10 : vector<4x16x12xf32> to vector<64x12xf32>
    %c0_3 = arith.constant 0 : index
    %c0_4 = arith.constant 0 : index
    %c0_5 = arith.constant 0 : index
    %12 = vector.load %arg3[%c0_3, %c0_4, %c0_5] : memref<3x12x128xf32, #tpu.memory_space<vmem>>, vector<1x12x128xf32>
    %13 = vector.shape_cast %12 : vector<1x12x128xf32> to vector<12x128xf32>
    %cst = arith.constant dense<0.000000e+00> : vector<64x128xf32>
    %14 = tpu.matmul %11, %13, %cst {dimension_numbers = #tpu.dot_dimension_numbers<[1], [0], [0], [1], [0, 0, 1, 1], [], []>} : vector<64x12xf32>, vector<12x128xf32>, vector<64x128xf32> -> vector<64x128xf32>
    %c0_6 = arith.constant 0 : index
    %c0_7 = arith.constant 0 : index
    %15 = vector.load %arg7[%c0_6, %c0_7] : memref<64x128xf32, #tpu.memory_space<vmem>>, vector<64x128xf32>
    tpu.vector_store %arg7[%c0_6, %c0_7], %14 {strides = array<i32>} : memref<64x128xf32, #tpu.memory_space<vmem>>, vector<64x128xf32>,
    %c1_i32 = arith.constant 1 : i32
    %16 = arith.addi %3, %c1_i32 : i32
    %17 = arith.index_cast %16 : i32 to index
    %c0_8 = arith.constant 0 : index
    %c0_9 = arith.constant 0 : index
    %18 = vector.load %arg6[%17, %c0_8, %c0_9] : memref<18x24x4xf32, #tpu.memory_space<vmem>>, vector<4x24x4xf32>
    %19 = vector.extract_strided_slice %18 {offsets = [0, 0, 0], sizes = [4, 16, 4], strides = [1, 1, 1]} : vector<4x24x4xf32> to vector<4x16x4xf32>
    %20 = vector.extract_strided_slice %18 {offsets = [0, 1, 0], sizes = [4, 16, 4], strides = [1, 1, 1]} : vector<4x24x4xf32> to vector<4x16x4xf32>
    %21 = vector.extract_strided_slice %18 {offsets = [0, 2, 0], sizes = [4, 16, 4], strides = [1, 1, 1]} : vector<4x24x4xf32> to vector<4x16x4xf32>
    %22 = tpu.concatenate %19, %20, %21 in 2 : vector<4x16x4xf32>, vector<4x16x4xf32>, vector<4x16x4xf32> -> vector<4x16x12xf32>
    %23 = vector.shape_cast %22 : vector<4x16x12xf32> to vector<64x12xf32>
    %c1 = arith.constant 1 : index
    %c0_10 = arith.constant 0 : index
    %c0_11 = arith.constant 0 : index
    %24 = vector.load %arg3[%c1, %c0_10, %c0_11] : memref<3x12x128xf32, #tpu.memory_space<vmem>>, vector<1x12x128xf32>
    %25 = vector.shape_cast %24 : vector<1x12x128xf32> to vector<12x128xf32>
    %cst_12 = arith.constant dense<0.000000e+00> : vector<64x128xf32>
    %26 = tpu.matmul %23, %25, %cst_12 {dimension_numbers = #tpu.dot_dimension_numbers<[1], [0], [0], [1], [0, 0, 1, 1], [], []>} : vector<64x12xf32>, vector<12x128xf32>, vector<64x128xf32> -> vector<64x128xf32>
    %c0_13 = arith.constant 0 : index
    %c0_14 = arith.constant 0 : index
    %27 = vector.load %arg7[%c0_13, %c0_14] : memref<64x128xf32, #tpu.memory_space<vmem>>, vector<64x128xf32>
    %28 = arith.addf %27, %26 : vector<64x128xf32>
    %c0_15 = arith.constant 0 : index
    %c0_16 = arith.constant 0 : index
    %29 = vector.load %arg7[%c0_15, %c0_16] : memref<64x128xf32, #tpu.memory_space<vmem>>, vector<64x128xf32>
    tpu.vector_store %arg7[%c0_15, %c0_16], %28 {strides = array<i32>} : memref<64x128xf32, #tpu.memory_space<vmem>>, vector<64x128xf32>,
    %c2_i32 = arith.constant 2 : i32
    %30 = arith.addi %3, %c2_i32 : i32
    %31 = arith.index_cast %30 : i32 to index
    %c0_17 = arith.constant 0 : index
    %c0_18 = arith.constant 0 : index
    %32 = vector.load %arg6[%31, %c0_17, %c0_18] : memref<18x24x4xf32, #tpu.memory_space<vmem>>, vector<4x24x4xf32>
    %33 = vector.extract_strided_slice %32 {offsets = [0, 0, 0], sizes = [4, 16, 4], strides = [1, 1, 1]} : vector<4x24x4xf32> to vector<4x16x4xf32>
    %34 = vector.extract_strided_slice %32 {offsets = [0, 1, 0], sizes = [4, 16, 4], strides = [1, 1, 1]} : vector<4x24x4xf32> to vector<4x16x4xf32>
    %35 = vector.extract_strided_slice %32 {offsets = [0, 2, 0], sizes = [4, 16, 4], strides = [1, 1, 1]} : vector<4x24x4xf32> to vector<4x16x4xf32>
    %36 = tpu.concatenate %33, %34, %35 in 2 : vector<4x16x4xf32>, vector<4x16x4xf32>, vector<4x16x4xf32> -> vector<4x16x12xf32>
    %37 = vector.shape_cast %36 : vector<4x16x12xf32> to vector<64x12xf32>
    %c2 = arith.constant 2 : index
    %c0_19 = arith.constant 0 : index
    %c0_20 = arith.constant 0 : index
    %38 = vector.load %arg3[%c2, %c0_19, %c0_20] : memref<3x12x128xf32, #tpu.memory_space<vmem>>, vector<1x12x128xf32>
    %39 = vector.shape_cast %38 : vector<1x12x128xf32> to vector<12x128xf32>
    %cst_21 = arith.constant dense<0.000000e+00> : vector<64x128xf32>
    %40 = tpu.matmul %37, %39, %cst_21 {dimension_numbers = #tpu.dot_dimension_numbers<[1], [0], [0], [1], [0, 0, 1, 1], [], []>} : vector<64x12xf32>, vector<12x128xf32>, vector<64x128xf32> -> vector<64x128xf32>
    %c0_22 = arith.constant 0 : index
    %c0_23 = arith.constant 0 : index
    %41 = vector.load %arg7[%c0_22, %c0_23] : memref<64x128xf32, #tpu.memory_space<vmem>>, vector<64x128xf32>
    %42 = arith.addf %41, %40 : vector<64x128xf32>
    %c0_24 = arith.constant 0 : index
    %c0_25 = arith.constant 0 : index
    %43 = vector.load %arg7[%c0_24, %c0_25] : memref<64x128xf32, #tpu.memory_space<vmem>>, vector<64x128xf32>
    tpu.vector_store %arg7[%c0_24, %c0_25], %42 {strides = array<i32>} : memref<64x128xf32, #tpu.memory_space<vmem>>, vector<64x128xf32>,
    %c0_26 = arith.constant 0 : index
    %c0_27 = arith.constant 0 : index
    %44 = vector.load %arg7[%c0_26, %c0_27] : memref<64x128xf32, #tpu.memory_space<vmem>>, vector<64x128xf32>
    %c0_28 = arith.constant 0 : index
    %c0_29 = arith.constant 0 : index
    %45 = vector.load %arg4[%c0_28, %c0_29] : memref<1x128xf32, #tpu.memory_space<vmem>>, vector<1x128xf32>
    %46 = vector.broadcast %45 : vector<1x128xf32> to vector<64x128xf32>
    %47 = arith.addf %44, %46 : vector<64x128xf32>
    %48 = vector.shape_cast %47 : vector<64x128xf32> to vector<4x16x128xf32>
    %c0_30 = arith.constant 0 : index
    %c0_31 = arith.constant 0 : index
    %c0_32 = arith.constant 0 : index
    %c0_33 = arith.constant 0 : index
    %49 = vector.load %arg5[%c0_30, %c0_31, %c0_32, %c0_33] : memref<1x4x16x128xf32, #tpu.memory_space<vmem>>, vector<1x4x16x128xf32>
    %50 = vector.shape_cast %49 : vector<1x4x16x128xf32> to vector<4x16x128xf32>
    %51 = vector.shape_cast %48 : vector<4x16x128xf32> to vector<1x4x16x128xf32>
    tpu.vector_store %arg5[%c0_30, %c0_31, %c0_32, %c0_33], %51 {strides = array<i32>} : memref<1x4x16x128xf32, #tpu.memory_space<vmem>>, vector<1x4x16x128xf32>,
    return
  }
  func.func @transform_0(%arg0: i32, %arg1: i32) -> (i32, i32, i32, i32) {
    %c0_i32 = arith.constant 0 : i32
    %c0_i32_0 = arith.constant 0 : i32
    %c0_i32_1 = arith.constant 0 : i32
    %c0_i32_2 = arith.constant 0 : i32
    return %arg0, %c0_i32, %c0_i32_0, %c0_i32_1 : i32, i32, i32, i32
  }
  func.func @transform_1(%arg0: i32, %arg1: i32) -> (i32, i32, i32) {
    %c0_i32 = arith.constant 0 : i32
    %c0_i32_0 = arith.constant 0 : i32
    %c0_i32_1 = arith.constant 0 : i32
    %c0_i32_2 = arith.constant 0 : i32
    return %c0_i32, %c0_i32_0, %c0_i32_1 : i32, i32, i32
  }
  func.func @transform_2(%arg0: i32, %arg1: i32) -> (i32, i32) {
    %c0_i32 = arith.constant 0 : i32
    %c0_i32_0 = arith.constant 0 : i32
    %c0_i32_1 = arith.constant 0 : i32
    return %c0_i32, %c0_i32_0 : i32, i32
  }
  func.func @transform_3(%arg0: i32, %arg1: i32) -> (i32, i32, i32, i32) {
    %c0_i32 = arith.constant 0 : i32
    %c0_i32_0 = arith.constant 0 : i32
    %c0_i32_1 = arith.constant 0 : i32
    return %arg0, %arg1, %c0_i32, %c0_i32_0 : i32, i32, i32, i32
  }
}

</mosaic_0001>

<bundles_post_ra>
// kernel: tpu_custom_call.1
= control target key start
LH: loop header
LB: loop body
LE: loop exit
PB: predicated region body
PF: predicated region fallthrough
CT: control target
= control target key end

     0   :  { %s2688_s0 = inlined_call_operand.hbm [shape: f32[2,16,16,4], index: 0, kind: input, shape index: {}]   ;;  %s2689_s1 = inlined_call_operand.hbm [shape: f32[3,12,128], index: 1, kind: input, shape index: {}]   ;;  %s2690_s2 = inlined_call_operand.hbm [shape: f32[1,128], index: 2, kind: input, shape index: {}]   ;;  %s2691_s3 = inlined_call_operand.hbm [shape: f32[2,16,16,128], index: 3, kind: output, shape index: {}]  }
   0x1   :  { %2703 = sst [smem:[#allocation18_spill]] %s2689_s1 }
   0x2   :  { %2704 = sst [smem:[#allocation19_spill]] %s2690_s2 }
   0x3   :  { %8 = vsyncpa [#allocation5], 0 }
   0x4   :  { %10 = vsyncpa [#allocation5 + $0x1], 0 }
   0x5   :  { %11 = vsyncpa [#allocation8], 0 }
   0x6   :  { %12 = vsyncpa [#allocation6], 0 }
   0x7   :  { %14 = vsyncpa [#allocation6 + $0x1], 0  ;;  %s1949_s12 = smov 0   ;;  %s1951_s13 = smov 0  }
   0x8   :  { %s1953_s14 = smov 0   ;;  %s1955_s15 = smov 0  }
   0x9   :  { %s1957_s16 = smov 0   ;;  %s1959_s17 = smov 0  }
   0xa   :  { %s1961_s18 = smov 0   ;;  %s1963_s19 = smov 0  }
   0xb   :  { %s1965_s20 = smov 0   ;;  %s1967_s21 = smov 0  }
   0xc   :  { %s1969_s22 = smov 0  }
   0xd LB: > { %2705 = sst [smem:[#allocation14_spill]] %s1876_s12  ;;  %s1378_s23 = sadd.s32 4294967295, %s1916_s22   ;;  %s1916_s22 = sphi %s1969_s22, %s20_s22   ;;  %s1912_s21 = sphi %s1967_s21, %s2741_s21   ;;  %s1908_s20 = sphi %s1965_s20, %s2732_s20   ;;  %s1904_s19 = sphi %s1963_s19, %s2740_s19   ;;  %s1900_s18 = sphi %s1961_s18, %s2731_s18   ;;  %s1896_s17 = sphi %s1959_s17, %s2739_s17   ;;  %s1892_s16 = sphi %s1957_s16, %s2738_s16   ;;  %s1888_s15 = sphi %s1955_s15, %s2737_s15   ;;  %s1884_s14 = sphi %s1953_s14, %s2736_s14   ;;  %s1880_s13 = sphi %s1951_s13, %s2735_s13   ;;  %s1876_s12 = sphi %s1949_s12, %s2734_s12  }
   0xe   : > { %2706 = sst [smem:[#allocation15_spill]] %s1908_s20  ;;  %s1379_s24 = sadd.s32 4294967294, %s1916_s22  }
   0xf   : > { %p52_p0 = scmp.ne.s32.totalorder %s1892_s16, %s1888_s15  ;;  %p2005_p1 = scmp.eq.s32.totalorder %s1378_s23, 0 }
  0x10   : > { %p119_p2 = scmp.ne.s32.totalorder %s1884_s14, %s1880_s13  ;;  %p120_p4 = scmp.eq.s32.totalorder %s1378_s23, 7 }
  0x11   : > { %s2707_s25 = scalar_select %p2005_p1, 1, 0 }
  0x12   : > { %p2014_p3 = por %p2005_p1, %p52_p0  ;;  %p125_p5 = scmp.ne.s32.totalorder %s1880_s13, %s1876_s12 }
  0x13   : > { %p126_p6 = scmp.eq.s32.totalorder %s1379_s24, 7  ;;  %p2020_p7 = por %p120_p4, %p119_p2 }
  0x14   : > { %s2708_s27 = scalar_select %p2014_p3, 1, 0 }
  0x15   : > { %s2709_s28 = scalar_select %p2020_p7, 1, 0 }
  0x16   : > { %p1380_p8 = scmp.ge.s32.totalorder %s1916_s22, 1  ;;  %p2025_p9 = por %p126_p6, %p125_p5 }
  0x17   : > { %p133_p10 = scmp.lt.s32.totalorder %s1916_s22, 9  ;;  %s1918_s4 = smov [#allocation7]  }
  0x18   : > { %s2710_s29 = scalar_select %p2025_p9, 1, 0 }
  0x19   : > { %p2030_p11 = pnand %p1380_p8, %p133_p10  ;;  %s145_s5 = sshll.u32 %s1918_s4, 4  ;;  %s146_s5 = int_to_ptr.vmem [resolvable:$true] %s145_s5 }
  0x1a   : > { %2711 = sst [smem:[#allocation16_spill]] %s2710_s29  ;;  %s1919_s7 = smov [#allocation9]  }
  0x1b   : > { %s2712_s30 = scalar_select %p2030_p11, 1, 0 }
  0x1c   : > { %p1586_p12 = pneg %p2030_p11  ;;  %s159_s8 = sshll.u32 %s1919_s7, 4  ;;  %s2042_s8 = int_to_ptr.vmem [resolvable:$true] %s159_s8 }
  0x1d   : > { %s2714_s1 = sld [smem:[#allocation18_spill]] }
  0x1e   : > { %p2038_p13 = pnand %p1586_p12, %p2005_p1 }
  0x20   : > { %p1706_p2 = pneg %p2038_p13 }
  0x23   : > { %s1704_s11 = scalar_lea.hbm %s2714_s1, 768 }
  0x24   : > { %p1705_p0 = scmp.ne.s32.totalorder %s2714_s1, %s1704_s11  ;;  %p1711_p6 = scmp.lt.u32.totalorder %s1704_s11, %s2714_s1 }
  0x26   : > { %p1707_p4 = pnand %p1706_p2, %p1705_p0 }
  0x28   : > { %p1708_p5 = pneg %p1707_p4 }
  0x2a   : > { %p1713_p8 = pnand %p1711_p6, %p1708_p5 }
  0x2c   : > { %1716 = shalt.err (!%p1713_p8)
}
  0x2d   : > { %s1717_s7 = scalar_lea.vmem %s146_s5, 768  ;;  %p1725_p7 = scmp.lt.s32.totalorder %s146_s5, %s146_s5 }
  0x2e   : > { %p1718_p10 = scmp.ne.s32.totalorder %s146_s5, %s1717_s7  ;;  %p1726_p1 = scmp.lt.s32.totalorder %s1717_s7, %s1717_s7 }
  0x30   : > { %p1720_p12 = pnand %p1718_p10, %p1706_p2  ;;  %p1727_p3 = por %p1726_p1, %p1725_p7 }
  0x32   : > { %p1721_p9 = pneg %p1720_p12 }
  0x34   : > { %p1728_p11 = pnand %p1727_p3, %p1721_p9 }
  0x36   : > { %1731 = shalt.err (!%p1728_p11)
}
  0x37   : > { %s2699_s9 = smov 128   ;;  %s2700_s10 = smov 8  }
  0x38   : > { %1589 = dma.hbm_to_vmem [thread:$0]  (!%p2038_p13), %s2714_s1, 768, %s146_s5, [#allocation8], %s2699_s9, %s2699_s9, %s2700_s10  }
  0x39   : > { %s2715_s2 = sld [smem:[#allocation19_spill]] }
  0x3f   : > { %s1732_s4 = scalar_lea.hbm %s2715_s2, 16 }
  0x40   : > { %p1733_p1 = scmp.ne.s32.totalorder %s2715_s2, %s1732_s4  ;;  %p1739_p9 = scmp.lt.u32.totalorder %s1732_s4, %s2715_s2 }
  0x42   : > { %p1735_p3 = pnand %p1733_p1, %p1706_p2 }
  0x44   : > { %p1736_p7 = pneg %p1735_p3 }
  0x46   : > { %p1741_p11 = pnand %p1739_p9, %p1736_p7 }
  0x48   : > { %1744 = shalt.err (!%p1741_p11)
}
  0x49   : > { %s1745_s5 = scalar_lea.vmem %s2042_s8, 16  ;;  %s1752_s26 = scalar_lea.vmem %s2042_s8, 32 }
  0x4a   : > { %p1746_p0 = scmp.ne.s32.totalorder %s2042_s8, %s1745_s5  ;;  %p1753_p6 = scmp.lt.s32.totalorder %s2042_s8, %s2042_s8 }
  0x4b   : > { %p1754_p8 = scmp.lt.s32.totalorder %s1752_s26, %s1745_s5 }
  0x4c   : > { %p1748_p4 = pnand %p1746_p0, %p1706_p2 }
  0x4d   : > { %p1755_p10 = por %p1754_p8, %p1753_p6 }
  0x4e   : > { %p1749_p5 = pneg %p1748_p4 }
  0x50   : > { %p1756_p12 = pnand %p1755_p10, %p1749_p5 }
  0x52   : > { %1759 = shalt.err (!%p1756_p12)
}
  0x53   : > { %1592 = dma.hbm_to_vmem [thread:$0]  (!%p2038_p13), %s2715_s2, 16, %s2042_s8, [#allocation8]  }
  0x54   : > { %s29_s11 = sadd.s32 1, %s1908_s20  ;;  %s32_s15 = sadd.s32 1, %s1912_s21 }
  0x55   : > { %p30_p2 = scmp.ge.s32.totalorder %s29_s11, 4  ;;  %s39_s6 = sadd.s32 1, %s1896_s17 }
  0x56   : > { %p46_p1 = scmp.ne.s32.totalorder %s1896_s17, %s1892_s16  ;;  %p47_p3 = scmp.eq.s32.totalorder %s1916_s22, 0 }
  0x57   : > { %s2743_s11 = smov (%p30_p2, %s29_s11), 0  ;;  %s2745_s15 = smov (!%p30_p2, %s32_s15), %s1912_s21 }
  0x58   : > { %2716 = sst [smem:[#allocation17_spill]] %s2743_s11  ;;  %p2104_p7 = por %p47_p3, %p46_p1 }
  0x59   : > { %s105_s24 = ssub.s32 %s1908_s20, %s2743_s11  ;;  %p34_p13 = scmp.ge.s32.totalorder %s2745_s15, 2 }
  0x5a   : > { %p1603_p9 = scmp.lt.s32.totalorder %s1916_s22, 8  ;;  %s170_s8 = sand.u32 1, %s1896_s17  }
  0x5b   : > { %s1458_s4 = sshll.u32 %s1912_s21, 12  ;;  %s2747_s15 = smov (%p34_p13, %s2745_s15), 0 }
  0x5c   : > { %s1384_s7 = sshll.u32 %s170_s8, 8  ;;  %s36_s5 = ssub.s32 %s1912_s21, %s2747_s15 }
  0x5d   : > { %p37_p11 = scmp.eq.s32.totalorder %s36_s5, 0  ;;  %s106_s26 = sor.u32 %s105_s24, %s36_s5 }
  0x5e   : > { %p107_p0 = scmp.eq.s32.totalorder %s106_s26, 0  ;;  %s2120_s9 = scalar_lea.hbm %s2688_s0, %s1458_s4 }
  0x5f   : > { %s2123_s10 = scalar_select %p37_p11, %s1896_s17, %s39_s6  }
  0x60   : > { %s2718_s1 = sadd.s32 1, %s1884_s14  ;;  %s174_s11 = scalar_lea.vmem [#allocation4], %s1384_s7 }
  0x61   : > { %s2128_s2 = scalar_select %p107_p0, %s1884_s14, %s2718_s1  }
  0x62   : > { %s181_s20 = sshll.u32 %s174_s11, 4  ;;  %p2134_p4 = pnand %p1603_p9, %p2104_p7  ;;  %s2138_s20 = int_to_ptr.vmem [resolvable:$true] %s181_s20 }
  0x63   : > { %s2140_s4 = scalar_lea.sflag [#allocation5], %s170_s8  ;;  %s1760_s6 = scalar_lea.hbm %s2120_s9, 4096 }
  0x64   : > { %p1761_p5 = scmp.ne.s32.totalorder %s2120_s9, %s1760_s6  ;;  %p1762_p6 = pneg %p2134_p4 }
  0x65   : > { %s1765_s23 = scalar_lea.hbm %s2688_s0, 8192  ;;  %p1766_p12 = scmp.lt.u32.totalorder %s2120_s9, %s2688_s0 }
  0x66   : > { %p1763_p8 = pnand %p1762_p6, %p1761_p5  ;;  %p1767_p2 = scmp.lt.u32.totalorder %s1765_s23, %s1760_s6 }
  0x67   : > { %p1769_p3 = scmp.lt.u32.totalorder %s1760_s6, %s2120_s9 }
  0x68   : > { %p1764_p10 = pneg %p1763_p8  ;;  %p1768_p1 = por %p1767_p2, %p1766_p12 }
  0x6a   : > { %p1770_p7 = por %p1769_p3, %p1768_p1 }
  0x6c   : > { %p1771_p13 = pnand %p1770_p7, %p1764_p10 }
  0x6e   : > { %1774 = shalt.err (!%p1771_p13)
}
  0x6f   : > { %s1775_s8 = scalar_lea.vmem %s2138_s20, 4096  ;;  %s1922_s26 = smov [#allocation4]  }
  0x70   : > { %p1776_p9 = scmp.ne.s32.totalorder %s2138_s20, %s1775_s8  ;;  %s1780_s12 = sshll.u32 %s1922_s26, 4  ;;  %s1781_s12 = int_to_ptr.vmem [resolvable:$false] %s1780_s12 }
  0x71   : > { %s1782_s29 = scalar_lea.vmem %s1781_s12, 8192  ;;  %p1783_p5 = scmp.lt.s32.totalorder %s2138_s20, %s1781_s12 }
  0x72   : > { %p1778_p11 = pnand %p1776_p9, %p1762_p6  ;;  %p1784_p8 = scmp.lt.s32.totalorder %s1782_s29, %s1775_s8 }
  0x74   : > { %p1779_p0 = pneg %p1778_p11  ;;  %p1785_p12 = por %p1784_p8, %p1783_p5 }
  0x76   : > { %p1786_p2 = pnand %p1785_p12, %p1779_p0 }
  0x78   : > { %1789 = shalt.err (!%p1786_p2)
}
  0x79   : > { %s2720_s6 = smov 8   ;;  %s2721_s1 = smov 128  }
  0x7a   : > { %1596 = dma.hbm_to_vmem [thread:$0]  (!%p2134_p4), %s2120_s9, 4096, %s2138_s20, %s2140_s4, %s2721_s1, %s2721_s1, %s2720_s6  }
  0x7b   : > { %p2722_p6 = scmp.ne.s32.totalorder %s2712_s30, 0 }
  0x7c   : > { %s195_s11 = sand.u32 (!%p2722_p6), 1, %s1892_s16   ;;  %p2723_p10 = scmp.ne.s32.totalorder (!%p2722_p6), %s2708_s27, 0 }
  0x7d   : > { %193 = sbr.rel (%p2722_p6) target bundleno = 631 (0x277), region = 32  ;;  %s1388_s23 = sshll.u32 (!%p2722_p6), %s195_s11, 8 }
  0x7e   : > { %s196_s7 = scalar_lea.sflag (!%p2722_p6), [#allocation5], %s195_s11  ;;  %s2174_s5 = scalar_lea.vmem (!%p2722_p6), [#allocation4], %s1388_s23 }
  0x84   : > { %1863 = dma.done.wait (%p2723_p10), %s196_s7, 4096  }
  0x85   : > { %1865 = vsyncadd (%p2723_p10), %s196_s7, 4294963200  ;;  %p2724_p1 = scmp.ne.s32.totalorder %s2707_s25, 0 }
  0x87   : > { %1867 = dma.done.wait (%p2724_p1), [#allocation8], 784  }
  0x88   : > { %1869 = vsyncadd (%p2724_p1), [#allocation8], 4294966512  ;;  %s227_s20 = sand.u32 1, %s1880_s13   ;;  %p1392_p4 = scmp.ne.s32.totalorder %s1900_s18, 0 }
  0x89   : > { %s1391_s30 = sshll.u32 %s227_s20, 6  ;;  %vm267_vm0 = vcmask (!%p1392_p4), 31744   ;;  %v235_v0 = vld [vmem:[%s2174_s5] sm:$0xff] (!%p1392_p4)  ;;  %v236_v1 = vld [vmem:[%s2174_s5 + $0x8] sm:$0xff] (!%p1392_p4)  ;;  %v237_v2 = vld [vmem:[%s2174_s5 + $0x10] sm:$0xff] (!%p1392_p4)  ;;  %v1923_v3 = vmov (!%p1392_p4), 0.0  }
  0x8a   : > { %s2187_s9 = scalar_lea.vmem [#allocation10], %s1391_s30  ;;  %234 = sbr.rel (%p1392_p4) target bundleno = 181 (0xb5), region = 48  ;;  %271 = vst.msk [vmem:[#allocation2 + $0x18] sm:$0xff] (!%p1392_p4), %vm267_vm0, %v1923_v3  ;;  %268 = vst.msk [vmem:[#allocation2] sm:$0xff] (!%p1392_p4), %vm267_vm0, %v1923_v3  ;;  %v238_v4 = vld [vmem:[%s2174_s5 + $0x18] sm:$0xff] (!%p1392_p4)  ;;  %v239_v5 = vld [vmem:[%s2174_s5 + $0x20] sm:$0xff] (!%p1392_p4) }
  0x8b   : > { %269 = vst.msk [vmem:[#allocation2 + $0x8] sm:$0xff] (!%p1392_p4), %vm267_vm0, %v1923_v3  ;;  %270 = vst.msk [vmem:[#allocation2 + $0x10] sm:$0xff] (!%p1392_p4), %vm267_vm0, %v1923_v3  ;;  %v240_v6 = vld [vmem:[%s2174_s5 + $0x28] sm:$0xff] (!%p1392_p4)  ;;  %v241_v7 = vld [vmem:[%s2174_s5 + $0x30] sm:$0xff] (!%p1392_p4) }
  0x8c   : > { %272 = vst.msk [vmem:[#allocation2 + $0x20] sm:$0xff] (!%p1392_p4), %vm267_vm0, %v1923_v3  ;;  %273 = vst.msk [vmem:[#allocation2 + $0x28] sm:$0xff] (!%p1392_p4), %vm267_vm0, %v1923_v3  ;;  %v242_v8 = vld [vmem:[%s2174_s5 + $0x38] sm:$0xff] (!%p1392_p4)  ;;  %v243_v9 = vld [vmem:[%s2174_s5 + $0x40] sm:$0xff] (!%p1392_p4) }
  0x8d   : > { %274 = vst.msk [vmem:[#allocation2 + $0x30] sm:$0xff] (!%p1392_p4), %vm267_vm0, %v1923_v3  ;;  %275 = vst.msk [vmem:[#allocation2 + $0x38] sm:$0xff] (!%p1392_p4), %vm267_vm0, %v1923_v3  ;;  %v244_v10 = vld [vmem:[%s2174_s5 + $0x48] sm:$0xff] (!%p1392_p4)  ;;  %v245_v11 = vld [vmem:[%s2174_s5 + $0x50] sm:$0xff] (!%p1392_p4) }
  0x8e   : > { %276 = vst.msk [vmem:[#allocation2 + $0x40] sm:$0xff] (!%p1392_p4), %vm267_vm0, %v1923_v3  ;;  %277 = vst.msk [vmem:[#allocation2 + $0x48] sm:$0xff] (!%p1392_p4), %vm267_vm0, %v1923_v3  ;;  %v246_v12 = vld [vmem:[%s2174_s5 + $0x58] sm:$0xff] (!%p1392_p4)  ;;  %v247_v13 = vld [vmem:[%s2174_s5 + $0x60] sm:$0xff] (!%p1392_p4) }
  0x8f   : > { %278 = vst.msk [vmem:[#allocation2 + $0x50] sm:$0xff] (!%p1392_p4), %vm267_vm0, %v1923_v3  ;;  %279 = vst.msk [vmem:[#allocation2 + $0x58] sm:$0xff] (!%p1392_p4), %vm267_vm0, %v1923_v3  ;;  %v248_v14 = vld [vmem:[%s2174_s5 + $0x68] sm:$0xff] (!%p1392_p4)  ;;  %v249_v15 = vld [vmem:[%s2174_s5 + $0x70] sm:$0xff] (!%p1392_p4) }
  0x90   : > { %280 = vst.msk [vmem:[#allocation2 + $0x60] sm:$0xff] (!%p1392_p4), %vm267_vm0, %v1923_v3  ;;  %281 = vst.msk [vmem:[#allocation2 + $0x68] sm:$0xff] (!%p1392_p4), %vm267_vm0, %v1923_v3  ;;  %v250_v16 = vld [vmem:[%s2174_s5 + $0x78] sm:$0xff] (!%p1392_p4)  ;;  %v251_v17 = vld [vmem:[%s2174_s5 + $0x80] sm:$0xff] (!%p1392_p4) }
  0x91   : > { %282 = vst.msk [vmem:[#allocation2 + $0x70] sm:$0xff] %vm267_vm0, %v1923_v3  ;;  %283 = vst.msk [vmem:[#allocation2 + $0x78] sm:$0xff] %vm267_vm0, %v1923_v3  ;;  %v252_v18 = vld [vmem:[%s2174_s5 + $0x88] sm:$0xff]  ;;  %v253_v19 = vld [vmem:[%s2174_s5 + $0x90] sm:$0xff] }
  0x92   : > { %284 = vst.msk [vmem:[#allocation2 + $0x80] sm:$0xff] %vm267_vm0, %v1923_v3  ;;  %285 = vst.msk [vmem:[#allocation2 + $0x88] sm:$0xff] %vm267_vm0, %v1923_v3  ;;  %v254_v20 = vld [vmem:[%s2174_s5 + $0x98] sm:$0xff]  ;;  %v255_v21 = vld [vmem:[%s2174_s5 + $0xa0] sm:$0xff] }
  0x93   : > { %286 = vst.msk [vmem:[#allocation2 + $0x90] sm:$0xff] %vm267_vm0, %v1923_v3  ;;  %287 = vst.msk [vmem:[#allocation2 + $0x98] sm:$0xff] %vm267_vm0, %v1923_v3  ;;  %v256_v22 = vld [vmem:[%s2174_s5 + $0xa8] sm:$0xff]  ;;  %v257_v23 = vld [vmem:[%s2174_s5 + $0xb0] sm:$0xff] }
  0x94   : > { %288 = vst.msk [vmem:[#allocation2 + $0xa0] sm:$0xff] %vm267_vm0, %v1923_v3  ;;  %289 = vst.msk [vmem:[#allocation2 + $0xa8] sm:$0xff] %vm267_vm0, %v1923_v3  ;;  %v258_v24 = vld [vmem:[%s2174_s5 + $0xb8] sm:$0xff]  ;;  %v259_v25 = vld [vmem:[%s2174_s5 + $0xc0] sm:$0xff] }
  0x95   : > { %290 = vst.msk [vmem:[#allocation2 + $0xb0] sm:$0xff] %vm267_vm0, %v1923_v3  ;;  %291 = vst.msk [vmem:[#allocation2 + $0xb8] sm:$0xff] %vm267_vm0, %v1923_v3  ;;  %v260_v26 = vld [vmem:[%s2174_s5 + $0xc8] sm:$0xff]  ;;  %v261_v27 = vld [vmem:[%s2174_s5 + $0xd0] sm:$0xff] }
  0x96   : > { %292 = vst.msk [vmem:[#allocation2 + $0xc0] sm:$0xff] %vm267_vm0, %v1923_v3  ;;  %293 = vst.msk [vmem:[#allocation2 + $0xc8] sm:$0xff] %vm267_vm0, %v1923_v3  ;;  %v262_v28 = vld [vmem:[%s2174_s5 + $0xd8] sm:$0xff]  ;;  %v263_v29 = vld [vmem:[%s2174_s5 + $0xe0] sm:$0xff] }
  0x97   : > { %294 = vst.msk [vmem:[#allocation2 + $0xd0] sm:$0xff] %vm267_vm0, %v1923_v3  ;;  %295 = vst.msk [vmem:[#allocation2 + $0xd8] sm:$0xff] %vm267_vm0, %v1923_v3  ;;  %v264_v30 = vld [vmem:[%s2174_s5 + $0xe8] sm:$0xff]  ;;  %v265_v31 = vld [vmem:[%s2174_s5 + $0xf0] sm:$0xff] }
  0x98   : > { %296 = vst.msk [vmem:[#allocation2 + $0xe0] sm:$0xff] %vm267_vm0, %v1923_v3  ;;  %297 = vst.msk [vmem:[#allocation2 + $0xe8] sm:$0xff] %vm267_vm0, %v1923_v3  ;;  %v266_v32 = vld [vmem:[%s2174_s5 + $0xf8] sm:$0xff] }
  0x99   : > { %298 = vst.msk [vmem:[#allocation2 + $0xf0] sm:$0xff] %vm267_vm0, %v1923_v3  ;;  %299 = vst.msk [vmem:[#allocation2 + $0xf8] sm:$0xff] %vm267_vm0, %v1923_v3 }
  0x9a   : > { %300 = vst.msk [vmem:[#allocation2 + $0x100] sm:$0xff] %vm267_vm0, %v1923_v3  ;;  %301 = vst.msk [vmem:[#allocation2 + $0x108] sm:$0xff] %vm267_vm0, %v1923_v3 }
  0x9b   : > { %302 = vst.msk [vmem:[#allocation2 + $0x110] sm:$0xff] %vm267_vm0, %v1923_v3  ;;  %303 = vst.msk [vmem:[#allocation2 + $0x118] sm:$0xff] %vm267_vm0, %v1923_v3 }
  0x9c   : > { %304 = vst.msk [vmem:[#allocation2 + $0x120] sm:$0xff] %vm267_vm0, %v1923_v3  ;;  %305 = vst.msk [vmem:[#allocation2 + $0x128] sm:$0xff] %vm267_vm0, %v1923_v3 }
  0x9d   : > { %306 = vst.msk [vmem:[#allocation2 + $0x130] sm:$0xff] %vm267_vm0, %v1923_v3  ;;  %307 = vst.msk [vmem:[#allocation2 + $0x138] sm:$0xff] %vm267_vm0, %v1923_v3 }
  0x9e   : > { %308 = vst.msk [vmem:[#allocation2 + $0x140] sm:$0xff] %vm267_vm0, %v1923_v3  ;;  %309 = vst.msk [vmem:[#allocation2 + $0x148] sm:$0xff] %vm267_vm0, %v1923_v3 }
  0x9f   : > { %310 = vst.msk [vmem:[#allocation2 + $0x150] sm:$0xff] %vm267_vm0, %v1923_v3  ;;  %311 = vst.msk [vmem:[#allocation2 + $0x158] sm:$0xff] %vm267_vm0, %v1923_v3 }
  0xa0   : > { %312 = vst.msk [vmem:[#allocation2 + $0x160] sm:$0xff] %vm267_vm0, %v1923_v3  ;;  %313 = vst.msk [vmem:[#allocation2 + $0x168] sm:$0xff] %vm267_vm0, %v1923_v3 }
  0xa1   : > { %314 = vst.msk [vmem:[#allocation2 + $0x170] sm:$0xff] %vm267_vm0, %v1923_v3  ;;  %315 = vst.msk [vmem:[#allocation2 + $0x178] sm:$0xff] %vm267_vm0, %v1923_v3 }
  0xa2   : > { %316 = vst.msk [vmem:[#allocation2 + $0x180] sm:$0xff] %vm267_vm0, %v1923_v3  ;;  %317 = vst.msk [vmem:[#allocation2 + $0x188] sm:$0xff] %vm267_vm0, %v1923_v3 }
  0xa3   : > { %318 = vst.msk [vmem:[#allocation2 + $0x190] sm:$0xff] %vm267_vm0, %v1923_v3  ;;  %319 = vst.msk [vmem:[#allocation2 + $0x198] sm:$0xff] %vm267_vm0, %v1923_v3 }
  0xa4   : > { %320 = vst.msk [vmem:[#allocation2 + $0x1a0] sm:$0xff] %vm267_vm0, %v1923_v3  ;;  %321 = vst.msk [vmem:[#allocation2 + $0x1a8] sm:$0xff] %vm267_vm0, %v1923_v3 }
  0xa5   : > { %323 = vst.msk [vmem:[#allocation2 + $0x19] sm:$0xff] %vm267_vm0, %v235_v0  ;;  %324 = vst.msk [vmem:[#allocation2 + $0x21] sm:$0xff] %vm267_vm0, %v236_v1 }
  0xa6   : > { %325 = vst.msk [vmem:[#allocation2 + $0x31] sm:$0xff] %vm267_vm0, %v237_v2  ;;  %326 = vst.msk [vmem:[#allocation2 + $0x39] sm:$0xff] %vm267_vm0, %v238_v4 }
  0xa7   : > { %327 = vst.msk [vmem:[#allocation2 + $0x49] sm:$0xff] %vm267_vm0, %v239_v5  ;;  %328 = vst.msk [vmem:[#allocation2 + $0x51] sm:$0xff] %vm267_vm0, %v240_v6 }
  0xa8   : > { %329 = vst.msk [vmem:[#allocation2 + $0x61] sm:$0xff] %vm267_vm0, %v241_v7  ;;  %330 = vst.msk [vmem:[#allocation2 + $0x69] sm:$0xff] %vm267_vm0, %v242_v8 }
  0xa9   : > { %331 = vst.msk [vmem:[#allocation2 + $0x79] sm:$0xff] %vm267_vm0, %v243_v9  ;;  %332 = vst.msk [vmem:[#allocation2 + $0x81] sm:$0xff] %vm267_vm0, %v244_v10 }
  0xaa   : > { %333 = vst.msk [vmem:[#allocation2 + $0x91] sm:$0xff] %vm267_vm0, %v245_v11  ;;  %334 = vst.msk [vmem:[#allocation2 + $0x99] sm:$0xff] %vm267_vm0, %v246_v12 }
  0xab   : > { %335 = vst.msk [vmem:[#allocation2 + $0xa9] sm:$0xff] %vm267_vm0, %v247_v13  ;;  %336 = vst.msk [vmem:[#allocation2 + $0xb1] sm:$0xff] %vm267_vm0, %v248_v14 }
  0xac   : > { %337 = vst.msk [vmem:[#allocation2 + $0xc1] sm:$0xff] %vm267_vm0, %v249_v15  ;;  %338 = vst.msk [vmem:[#allocation2 + $0xc9] sm:$0xff] %vm267_vm0, %v250_v16 }
  0xad   : > { %339 = vst.msk [vmem:[#allocation2 + $0xd9] sm:$0xff] %vm267_vm0, %v251_v17  ;;  %340 = vst.msk [vmem:[#allocation2 + $0xe1] sm:$0xff] %vm267_vm0, %v252_v18 }
  0xae   : > { %341 = vst.msk [vmem:[#allocation2 + $0xf1] sm:$0xff] %vm267_vm0, %v253_v19  ;;  %342 = vst.msk [vmem:[#allocation2 + $0xf9] sm:$0xff] %vm267_vm0, %v254_v20 }
  0xaf   : > { %343 = vst.msk [vmem:[#allocation2 + $0x109] sm:$0xff] %vm267_vm0, %v255_v21  ;;  %344 = vst.msk [vmem:[#allocation2 + $0x111] sm:$0xff] %vm267_vm0, %v256_v22 }
  0xb0   : > { %345 = vst.msk [vmem:[#allocation2 + $0x121] sm:$0xff] %vm267_vm0, %v257_v23  ;;  %346 = vst.msk [vmem:[#allocation2 + $0x129] sm:$0xff] %vm267_vm0, %v258_v24 }
  0xb1   : > { %347 = vst.msk [vmem:[#allocation2 + $0x139] sm:$0xff] %vm267_vm0, %v259_v25  ;;  %348 = vst.msk [vmem:[#allocation2 + $0x141] sm:$0xff] %vm267_vm0, %v260_v26 }
  0xb2   : > { %349 = vst.msk [vmem:[#allocation2 + $0x151] sm:$0xff] %vm267_vm0, %v261_v27  ;;  %350 = vst.msk [vmem:[#allocation2 + $0x159] sm:$0xff] %vm267_vm0, %v262_v28 }
  0xb3   : > { %351 = vst.msk [vmem:[#allocation2 + $0x169] sm:$0xff] %vm267_vm0, %v263_v29  ;;  %352 = vst.msk [vmem:[#allocation2 + $0x171] sm:$0xff] %vm267_vm0, %v264_v30 }
  0xb4   : > { %353 = vst.msk [vmem:[#allocation2 + $0x181] sm:$0xff] %vm267_vm0, %v265_v31  ;;  %354 = vst.msk [vmem:[#allocation2 + $0x189] sm:$0xff] %vm267_vm0, %v266_v32 }
  0xb5 PF: > { %s1394_s25 = smul.u32 96, %s1900_s18  ;;  %v490_v33 = vld [vmem:[#allocation7] sm:$0xff]  ;;  %v491_v34 = vld [vmem:[#allocation7 + $0x8] sm:$0xf]  ;;  %vm517_vm1 = vcmask 1043456   ;;  %v766_v36 = vld [vmem:[#allocation7 + $0x10] sm:$0xff] }
  0xb6   : > { %v1538_v35 = vpack.c.bf16 %v491_v34, %v490_v33  ;;  %v767_v37 = vld [vmem:[#allocation7 + $0x18] sm:$0xf]  ;;  %vm382_vm2 = vcmask 1046528   ;;  %vm1924_vm3 = vmmov 1   ;;  %vm427_vm5 = vcmask 1045504   ;;  %s1925_s24 = smov 4  }
  0xb7   : > { %s2309_s27 = scalar_lea.vmem [#allocation2], %s1394_s25  ;;  %v2318_v41 = vpack.c.bf16 %v767_v37, %v766_v36  ;;  %vm2330_vm4 = vmpackc.low %vm517_vm1, %vm1924_vm3  ;;  %s1926_s4 = smov 8   ;;  %v1056_v31 = vld [vmem:[#allocation7 + $0x20] sm:$0xff]  ;;  %v1057_v32 = vld [vmem:[#allocation7 + $0x28] sm:$0xf]  ;;  %vm472_vm6 = vcmask 31744  }
  0xb8   : > { %1540 = vmatprep.subr.msk.bf16.mxu1 %vm2330_vm4, %v1538_v35  ;;  %v2422_v33 = vpack.c.bf16 %v1057_v32, %v1056_v31  ;;  %vm481_vm7 = vcmask 64512   ;;  %vm492_vm8 = vcmask 97280   ;;  %s1459_s8 = sshll.u32 %s1900_s18, 3  ;;  %s1454_s26 = sshll.u32 %s1904_s19, 5 }
  0xb9   : > { %1546 = vmatprep.subr.msk.bf16.mxu0 %vm2330_vm4, %v2318_v41  ;;  %1543 = vmatpush3.bf16.msk.msra.mxu1 %vm2330_vm4, %v1538_v35  ;;  %s1259_s12 = sadd.s32 %s1459_s8, %s1454_s26  ;;  %s1262_s6 = sshll.u32 %s2187_s9, 4  ;;  %s2620_s6 = int_to_ptr.vmem [resolvable:$true] %s1262_s6 }
  0xba   : > { %1549 = vmatpush3.bf16.msk.msra.mxu0 %vm2330_vm4, %v2318_v41  ;;  %1556 = vmatprep.subr.msk.bf16.mxu1 %vm2330_vm4, %v2318_v41  ;;  %s1455_s29 = sshll.u32 %s1259_s12, 7  ;;  %s2626_s18 = scalar_lea.sflag [#allocation6], %s227_s20 }
  0xbb   : > { %v2312_v38 = vld [vmem:[%s2309_s27 + $0x8] sm:$0xff]  ;;  %v360_v39 = vld [vmem:[%s2309_s27 + $0x10] sm:$0xff]  ;;  %v2316_v40 = vld [vmem:[%s2309_s27] sm:$0xff]  ;;  %1552 = vmatprep.subr.msk.bf16.mxu0 %vm2330_vm4, %v2422_v33  ;;  %s2618_s23 = scalar_lea.hbm %s2691_s3, %s1455_s29  ;;  %s1790_s19 = scalar_lea.vmem %s2620_s6, 1024 }
  0xbc   : > { %v384_v42 = vrot.slane %v2312_v38, 1  ;;  %v386_v43 = vrot.slane %v360_v39, 1  ;;  %v383_v44 = vrot.slane %v2316_v40, 1  ;;  %v428_v45 = vrot.slane %v2316_v40, 2  ;;  %v2324_v46 = vld [vmem:[%s2309_s27 + $0x18] sm:$0xff]  ;;  %v2327_v47 = vld [vmem:[%s2309_s27 + $0x20] sm:$0xff]  ;;  %p1791_p3 = scmp.ne.s32.totalorder %s2620_s6, %s1790_s19 }
  0xbd   : > { %v429_v49 = vrot.slane %v2312_v38, 2  ;;  %v661_v50 = vrot.slane %v2324_v46, 1  ;;  %v662_v51 = vrot.slane %v2327_v47, 1  ;;  %v1408_v52 = vld [vmem:[%s2309_s27 + $0x28] sm:$0xff]  ;;  %v705_v55 = vrot.slane %v2324_v46, 2  ;;  %v2362_v60 = vld [vmem:[%s2309_s27 + $0x30] sm:$0xff] }
  0xbe   : > { %v387_v53 = vsel %vm382_vm2, %v384_v42, %v386_v43  ;;  %v385_v54 = vsel %vm382_vm2, %v383_v44, %v384_v42  ;;  %v706_v58 = vrot.slane %v2327_v47, 2  ;;  %v664_v59 = vrot.slane %v1408_v52, 1  ;;  %v2365_v61 = vld [vmem:[%s2309_s27 + $0x38] sm:$0xff]  ;;  %v2370_v2 = vld [vmem:[%s2309_s27 + $0x68] sm:$0xff]  ;;  %v1437_v3 = vld [vmem:[%s2309_s27 + $0x70] sm:$0xff]  ;;  %p2727_p7 = scmp.ne.s32.totalorder %s2709_s28, 0 }
  0xbf   : > { %405 = vrot.lane.b32.xlu1 %v387_v53, %s1925_s24  ;;  %403 = vrot.lane.b32.xlu0 %v385_v54, %s1925_s24  ;;  %v430_v56 = vsel %vm427_vm5, %v428_v45, %v429_v49  ;;  %v663_v57 = vsel %vm382_vm2, %v661_v50, %v662_v51  ;;  %v708_v0 = vrot.slane %v1408_v52, 2  ;;  %v431_v1 = vrot.slane %v360_v39, 2  ;;  %v2374_v4 = vld [vmem:[%s2309_s27 + $0x80] sm:$0xff]  ;;  %v1440_v7 = vld [vmem:[%s2309_s27 + $0x88] sm:$0xff]  ;;  %s1927_s7 = smov [#allocation10]  }
  0xc0   : > { %v707_v62 = vsel %vm427_vm5, %v705_v55, %v706_v58  ;;  %v665_v63 = vsel %vm382_vm2, %v662_v51, %v664_v59  ;;  %v666_v5 = vrot.slane %v2362_v60, 1  ;;  %v667_v6 = vrot.slane %v2365_v61, 1  ;;  %v1411_v23 = vld [vmem:[%s2309_s27 + $0x40] sm:$0xff]  ;;  %v2434_v34 = vld [vmem:[%s2309_s27 + $0x48] sm:$0xff]  ;;  %v2437_v35 = vld [vmem:[%s2309_s27 + $0x50] sm:$0xff]  ;;  %p1792_p13 = pnand %p1791_p3, %p2727_p7  ;;  %s1794_s5 = sshll.u32 %s1927_s7, 4  ;;  %s1795_s5 = int_to_ptr.vmem [resolvable:$false] %s1794_s5 }
  0xc1   : > { %v962_v8 = vrot.slane %v2370_v2, 1  ;;  %v1006_v9 = vrot.slane %v2370_v2, 2  ;;  %v964_v10 = vrot.slane %v1437_v3, 1  ;;  %v1008_v11 = vrot.slane %v1437_v3, 2  ;;  %v369_v39 = vld [vmem:[%s2309_s27 + $0x58] sm:$0xff]  ;;  %v2456_v52 = vld [vmem:[%s2309_s27 + $0x60] sm:$0xff]  ;;  %p1797_p11 = scmp.lt.s32.totalorder %s2620_s6, %s1795_s5 }
  0xc2   : > { %v709_v12 = vsel %vm427_vm5, %v706_v58, %v708_v0  ;;  %v432_v13 = vsel %vm427_vm5, %v429_v49, %v431_v1  ;;  %v967_v14 = vrot.slane %v2374_v4, 1  ;;  %v1011_v15 = vrot.slane %v2374_v4, 2  ;;  %v2476_v58 = vld [vmem:[%s2309_s27 + $0x78] sm:$0xff]  ;;  %p1793_p9 = pneg %p1792_p13  ;;  %s1796_s30 = scalar_lea.vmem %s1795_s5, 2048 }
  0xc3   : > { %448 = vrot.lane.b32.xlu1 %v430_v56, %s1926_s4  ;;  %681 = vrot.lane.b32.xlu0 %v663_v57, %s1925_s24  ;;  %v2390_v16 = vsel %vm382_vm2, %v962_v8, %v964_v10  ;;  %v2395_v17 = vsel %vm427_vm5, %v1006_v9, %v1008_v11  ;;  %v969_v18 = vrot.slane %v1440_v7, 1  ;;  %v1013_v19 = vrot.slane %v1440_v7, 2  ;;  %p1798_p0 = scmp.lt.s32.totalorder %s1796_s30, %s1790_s19 }
  0xc4   : > { %v668_v22 = vsel %vm382_vm2, %v666_v5, %v667_v6  ;;  %v710_v24 = vrot.slane %v2362_v60, 2  ;;  %v711_v25 = vrot.slane %v2365_v61, 2  ;;  %v669_v26 = vrot.slane %v1411_v23, 1 }
  0xc5   : > { %v2402_v20 = vsel %vm382_vm2, %v967_v14, %v969_v18  ;;  %v2407_v21 = vsel %vm427_vm5, %v1011_v15, %v1013_v19  ;;  %v713_v29 = vrot.slane %v1411_v23, 2  ;;  %v956_v36 = vrot.slane %v2434_v34, 1  ;;  %p1799_p5 = por %p1798_p0, %p1797_p11 }
  0xc6   : > { %v712_v27 = vsel %vm427_vm5, %v710_v24, %v711_v25  ;;  %v670_v28 = vsel %vm382_vm2, %v667_v6, %v669_v26  ;;  %v957_v37 = vrot.slane %v2437_v35, 1  ;;  %v443_v43 = vrot.slane %v2434_v34, 2 }
  0xc7   : > { %725 = vrot.lane.b32.xlu1 %v707_v62, %s1926_s4  ;;  %683 = vrot.lane.b32.xlu0 %v665_v63, %s1925_s24  ;;  %v714_v30 = vsel %vm427_vm5, %v711_v25, %v713_v29  ;;  %v444_v44 = vrot.slane %v2437_v35, 2  ;;  %v401_v45 = vrot.slane %v369_v39, 1  ;;  %v1003_v51 = vrot.slane %v369_v39, 2  ;;  %p1800_p8 = pnand %p1799_p5, %p1793_p9 }
  0xc8   : > { %v958_v42 = vsel %vm382_vm2, %v956_v36, %v957_v37  ;;  %v961_v54 = vrot.slane %v2456_v52, 1  ;;  %v1005_v56 = vrot.slane %v2456_v52, 2  ;;  %v966_v59 = vrot.slane %v2476_v58, 1 }
  0xc9   : > { %v445_v49 = vsel %vm427_vm5, %v443_v43, %v444_v44  ;;  %v402_v50 = vsel %vm382_vm2, %v957_v37, %v401_v45  ;;  %v1004_v53 = vsel %vm427_vm5, %v444_v44, %v1003_v51 }
  0xca   : > { %v963_v55 = vsel %vm382_vm2, %v961_v54, %v962_v8 }
  0xcb   : > { %727 = vrot.lane.b32.xlu1 %v709_v12, %s1926_s4  ;;  %450 = vrot.lane.b32.xlu0 %v432_v13, %s1926_s4 }
  0xcf   : > { %685 = vrot.lane.b32.xlu1 %v668_v22, %s1925_s24  ;;  %407 = vrot.lane.b32.xlu0 %v663_v57, %s1925_s24  ;;  %v1007_v57 = vsel %vm427_vm5, %v1005_v56, %v1006_v9 }
  0xd3   : > { %452 = vrot.lane.b32.xlu1 %v707_v62, %s1926_s4  ;;  %409 = vrot.lane.b32.xlu0 %v665_v63, %s1925_s24  ;;  %v968_v62 = vsel %vm382_vm2, %v966_v59, %v967_v14  ;;  %v1010_v63 = vrot.slane %v2476_v58, 2 }
  0xd5   : > { %v1012_v0 = vsel %vm427_vm5, %v1010_v63, %v1011_v15 }
  0xd7   : > { %729 = vrot.lane.b32.xlu1 %v712_v27, %s1926_s4  ;;  %687 = vrot.lane.b32.xlu0 %v670_v28, %s1925_s24 }
  0xdb   : > { %731 = vrot.lane.b32.xlu1 %v714_v30, %s1926_s4  ;;  %454 = vrot.lane.b32.xlu0 %v709_v12, %s1926_s4 }
  0xdf   : > { %971 = vrot.lane.b32.xlu1 %v668_v22, %s1925_s24  ;;  %411 = vrot.lane.b32.xlu0 %v668_v22, %s1925_s24 }
  0xe3   : > { %456 = vrot.lane.b32.xlu1 %v712_v27, %s1926_s4  ;;  %413 = vrot.lane.b32.xlu0 %v670_v28, %s1925_s24 }
  0xe7   : > { %1015 = vrot.lane.b32.xlu1 %v712_v27, %s1926_s4  ;;  %973 = vrot.lane.b32.xlu0 %v670_v28, %s1925_s24 }
  0xeb   : > { %1017 = vrot.lane.b32.xlu1 %v714_v30, %s1926_s4  ;;  %458 = vrot.lane.b32.xlu0 %v714_v30, %s1926_s4 }
  0xef   : > { %975 = vrot.lane.b32.xlu1 %v958_v42, %s1925_s24  ;;  %415 = vrot.lane.b32.xlu0 %v958_v42, %s1925_s24 }
  0xf3   : > { %460 = vrot.lane.b32.xlu1 %v445_v49, %s1926_s4  ;;  %417 = vrot.lane.b32.xlu0 %v402_v50, %s1925_s24 }
  0xf7   : > { %1019 = vrot.lane.b32.xlu1 %v445_v49, %s1926_s4  ;;  %977 = vrot.lane.b32.xlu0 %v402_v50, %s1925_s24 }
  0xfb   : > { %1021 = vrot.lane.b32.xlu1 %v1004_v53, %s1926_s4  ;;  %462 = vrot.lane.b32.xlu0 %v1004_v53, %s1926_s4 }
  0xff   : > { %979 = vrot.lane.b32.xlu1 %v963_v55, %s1925_s24  ;;  %689 = vrot.lane.b32.xlu0 %v958_v42, %s1925_s24 }
 0x103   : > { %733 = vrot.lane.b32.xlu1 %v445_v49, %s1926_s4  ;;  %691 = vrot.lane.b32.xlu0 %v402_v50, %s1925_s24 }
 0x107   : > { %1023 = vrot.lane.b32.xlu1 %v1007_v57, %s1926_s4  ;;  %981 = vrot.lane.b32.xlu0 %v2390_v16, %s1925_s24 }
 0x10b   : > { %1025 = vrot.lane.b32.xlu1 %v2395_v17, %s1926_s4  ;;  %735 = vrot.lane.b32.xlu0 %v1004_v53, %s1926_s4 }
 0x10f   : > { %983 = vrot.lane.b32.xlu1 %v968_v62, %s1925_s24  ;;  %693 = vrot.lane.b32.xlu0 %v963_v55, %s1925_s24 }
 0x113   : > { %737 = vrot.lane.b32.xlu1 %v1007_v57, %s1926_s4  ;;  %695 = vrot.lane.b32.xlu0 %v2390_v16, %s1925_s24 }
 0x117   : > { %1027 = vrot.lane.b32.xlu1 %v1012_v0, %s1926_s4  ;;  %985 = vrot.lane.b32.xlu0 %v2402_v20, %s1925_s24 }
 0x11b   : > { %1029 = vrot.lane.b32.xlu1 %v2407_v21, %s1926_s4  ;;  %739 = vrot.lane.b32.xlu0 %v2395_v17, %s1926_s4 }
 0x131   : > { %v406_v1 = vpop.permute.xlu1 %405  ;;  %v404_v3 = vpop.permute.xlu0 %403 }
 0x132   : > { %v473_v5 = vsel %vm472_vm6, %v2316_v40, %v404_v3  ;;  %v474_v13 = vsel %vm472_vm6, %v2312_v38, %v406_v1 }
 0x135   : > { %v449_v6 = vpop.permute.xlu1 %448  ;;  %v682_v7 = vpop.permute.xlu0 %681 }
 0x136   : > { %v482_v8 = vsel %vm481_vm7, %v473_v5, %v449_v6  ;;  %v749_v9 = vsel %vm472_vm6, %v2324_v46, %v682_v7 }
 0x137   : > { %1494 = vmatprep.mubr.msk.f32.mxu1 %vm492_vm8, %v482_v8 }
 0x139   : > { %v726_v10 = vpop.permute.xlu1 %725  ;;  %v684_v11 = vpop.permute.xlu0 %683 }
 0x13a   : > { %v757_v12 = vsel %vm481_vm7, %v749_v9, %v726_v10  ;;  %v750_v40 = vsel %vm472_vm6, %v2327_v47, %v684_v11 }
 0x13b   : > { %1510 = vmatprep.mubr.msk.f32.mxu0 %vm492_vm8, %v757_v12 }
 0x13d   : > { %v728_v14 = vpop.permute.xlu1 %727  ;;  %v451_v15 = vpop.permute.xlu0 %450 }
 0x13e   : > { %v758_v16 = vsel %vm481_vm7, %v750_v40, %v728_v14  ;;  %v483_v17 = vsel %vm481_vm7, %v474_v13, %v451_v15 }
 0x13f   : > { %1495 = vmatmul.mubr.msk.f32.vlgmr.msra.gmra.mrb[0].mxu1 %vm492_vm8, %v483_v17  ;;  %1511 = vmatmul.mubr.msk.f32.vlgmr.msra.gmra.mrb[0].mxu0 %vm492_vm8, %v758_v16 }
 0x140   : > { %1555 = vmatpush3.bf16.msk.msra.mxu0 %vm2330_vm4, %v2422_v33  ;;  %1557 = vmatpush3.bf16.msk.msra.mxu1 %vm2330_vm4, %v2318_v41 }
 0x141   : > { %v686_v38 = vpop.permute.xlu1 %685  ;;  %v408_v18 = vpop.permute.xlu0 %407 }
 0x142   : > { %v475_v19 = vsel %vm472_vm6, %v2324_v46, %v408_v18  ;;  %v751_v23 = vsel %vm472_vm6, %v2362_v60, %v686_v38 }
 0x145   : > { %v453_v20 = vpop.permute.xlu1 %452  ;;  %v410_v21 = vpop.permute.xlu0 %409 }
 0x146   : > { %v484_v22 = vsel %vm481_vm7, %v475_v19, %v453_v20  ;;  %v476_v41 = vsel %vm472_vm6, %v2327_v47, %v410_v21 }
 0x147   : > { %1497 = vmatprep.mubr.msk.f32.mxu1 %vm492_vm8, %v484_v22 }
 0x149   : > { %v730_v24 = vpop.permute.xlu1 %729  ;;  %v688_v25 = vpop.permute.xlu0 %687 }
 0x14a   : > { %v759_v26 = vsel %vm481_vm7, %v751_v23, %v730_v24  ;;  %v752_v46 = vsel %vm472_vm6, %v2365_v61, %v688_v25 }
 0x14b   : > { %1513 = vmatprep.mubr.msk.f32.mxu0 %vm492_vm8, %v759_v26 }
 0x14d   : > { %v732_v48 = vpop.permute.xlu1 %731  ;;  %v455_v27 = vpop.permute.xlu0 %454 }
 0x14e   : > { %v760_v28 = vsel %vm481_vm7, %v752_v46, %v732_v48  ;;  %v485_v29 = vsel %vm481_vm7, %v476_v41, %v455_v27 }
 0x14f   : > { %1498 = vmatmul.mubr.msk.f32.gmra.mrb[2].mxu1 %vm492_vm8, %v485_v29  ;;  %1514 = vmatmul.mubr.msk.f32.gmra.mrb[2].mxu0 %vm492_vm8, %v760_v28 }
 0x151   : > { %v972_v30 = vpop.permute.xlu1 %971  ;;  %v412_v31 = vpop.permute.xlu0 %411 }
 0x152   : > { %v477_v32 = vsel %vm472_vm6, %v2362_v60, %v412_v31  ;;  %v1039_v37 = vsel %vm472_vm6, %v2362_v60, %v972_v30 }
 0x155   : > { %v457_v33 = vpop.permute.xlu1 %456  ;;  %v414_v47 = vpop.permute.xlu0 %413 }
 0x156   : > { %v486_v36 = vsel %vm481_vm7, %v477_v32, %v457_v33  ;;  %v478_v44 = vsel %vm472_vm6, %v2365_v61, %v414_v47 }
 0x157   : > { %1500 = vmatprep.mubr.msk.f32.mxu1 %vm492_vm8, %v486_v36 }
 0x159   : > { %v1016_v39 = vpop.permute.xlu1 %1015  ;;  %v974_v42 = vpop.permute.xlu0 %973 }
 0x15a   : > { %v1047_v43 = vsel %vm481_vm7, %v1039_v37, %v1016_v39  ;;  %v1040_v45 = vsel %vm472_vm6, %v2365_v61, %v974_v42 }
 0x15b   : > { %1526 = vmatprep.mubr.msk.f32.mxu0 %vm492_vm8, %v1047_v43 }
 0x15d   : > { %v1018_v49 = vpop.permute.xlu1 %1017  ;;  %v459_v50 = vpop.permute.xlu0 %458 }
 0x15e   : > { %v1048_v51 = vsel %vm481_vm7, %v1040_v45, %v1018_v49  ;;  %v487_v53 = vsel %vm481_vm7, %v478_v44, %v459_v50 }
 0x15f   : > { %1501 = vmatmul.mubr.msk.f32.gmra.mrb[4].mxu1 %vm492_vm8, %v487_v53  ;;  %1527 = vmatmul.mubr.msk.f32.vlgmr.msra.gmra.mrb[0].mxu0 %vm492_vm8, %v1048_v51 }
 0x161   : > { %v976_v60 = vpop.permute.xlu1 %975  ;;  %v416_v54 = vpop.permute.xlu0 %415 }
 0x162   : > { %v479_v55 = vsel %vm472_vm6, %v2434_v34, %v416_v54  ;;  %v1041_v61 = vsel %vm472_vm6, %v2434_v34, %v976_v60 }
 0x165   : > { %v461_v56 = vpop.permute.xlu1 %460  ;;  %v418_v57 = vpop.permute.xlu0 %417 }
 0x166   : > { %v488_v59 = vsel %vm481_vm7, %v479_v55, %v461_v56  ;;  %v480_v1 = vsel %vm472_vm6, %v2437_v35, %v418_v57 }
 0x167   : > { %1503 = vmatprep.mubr.msk.f32.mxu1 %vm492_vm8, %v488_v59 }
 0x169   : > { %v1020_v62 = vpop.permute.xlu1 %1019  ;;  %v978_v63 = vpop.permute.xlu0 %977 }
 0x16a   : > { %v1049_v0 = vsel %vm481_vm7, %v1041_v61, %v1020_v62  ;;  %v1042_v3 = vsel %vm472_vm6, %v2437_v35, %v978_v63 }
 0x16b   : > { %1529 = vmatprep.mubr.msk.f32.mxu0 %vm492_vm8, %v1049_v0 }
 0x16d   : > { %v1022_v5 = vpop.permute.xlu1 %1021  ;;  %v463_v6 = vpop.permute.xlu0 %462 }
 0x16e   : > { %v1050_v7 = vsel %vm481_vm7, %v1042_v3, %v1022_v5  ;;  %v489_v8 = vsel %vm481_vm7, %v480_v1, %v463_v6 }
 0x16f   : > { %1504 = vmatmul.mubr.msk.f32.gmra.mrb[6].mxu1 %vm492_vm8, %v489_v8  ;;  %1530 = vmatmul.mubr.msk.f32.gmra.mrb[2].mxu0 %vm492_vm8, %v1050_v7 }
 0x171   : > { %v980_v9 = vpop.permute.xlu1 %979  ;;  %v690_v10 = vpop.permute.xlu0 %689 }
 0x172   : > { %v753_v11 = vsel %vm472_vm6, %v2434_v34, %v690_v10  ;;  %v1043_v14 = vsel %vm472_vm6, %v2456_v52, %v980_v9 }
 0x175   : > { %v734_v12 = vpop.permute.xlu1 %733  ;;  %v692_v13 = vpop.permute.xlu0 %691 }
 0x176   : > { %v761_v40 = vsel %vm481_vm7, %v753_v11, %v734_v12  ;;  %v754_v38 = vsel %vm472_vm6, %v2437_v35, %v692_v13 }
 0x177   : > { %1516 = vmatprep.mubr.msk.f32.mxu1 %vm492_vm8, %v761_v40 }
 0x179   : > { %v1024_v15 = vpop.permute.xlu1 %1023  ;;  %v982_v16 = vpop.permute.xlu0 %981 }
 0x17a   : > { %v1051_v17 = vsel %vm481_vm7, %v1043_v14, %v1024_v15  ;;  %v1044_v34 = vsel %vm472_vm6, %v2370_v2, %v982_v16 }
 0x17b   : > { %1532 = vmatprep.mubr.msk.f32.mxu0 %vm492_vm8, %v1051_v17 }
 0x17d   : > { %v1026_v18 = vpop.permute.xlu1 %1025  ;;  %v736_v19 = vpop.permute.xlu0 %735 }
 0x17e   : > { %v1052_v20 = vsel %vm481_vm7, %v1044_v34, %v1026_v18  ;;  %v762_v21 = vsel %vm481_vm7, %v754_v38, %v736_v19 }
 0x17f   : > { %1517 = vmatmul.mubr.msk.f32.vlgmr.msra.gmra.mrb[4].mxu1 %vm492_vm8, %v762_v21  ;;  %1533 = vmatmul.mubr.msk.f32.gmra.mrb[4].mxu0 %vm492_vm8, %v1052_v20 }
 0x181   : > { %v984_v22 = vpop.permute.xlu1 %983  ;;  %v694_v23 = vpop.permute.xlu0 %693 }
 0x182   : > { %v755_v24 = vsel %vm472_vm6, %v2456_v52, %v694_v23  ;;  %v1045_v41 = vsel %vm472_vm6, %v2476_v58, %v984_v22 }
 0x185   : > { %v738_v25 = vpop.permute.xlu1 %737  ;;  %v696_v35 = vpop.permute.xlu0 %695 }
 0x186   : > { %v763_v26 = vsel %vm481_vm7, %v755_v24, %v738_v25  ;;  %v756_v28 = vsel %vm472_vm6, %v2370_v2, %v696_v35 }
 0x187   : > { %1519 = vmatprep.mubr.msk.f32.mxu1 %vm492_vm8, %v763_v26 }
 0x189   : > { %v1028_v46 = vpop.permute.xlu1 %1027  ;;  %v986_v48 = vpop.permute.xlu0 %985 }
 0x18a   : > { %v1053_v27 = vsel %vm481_vm7, %v1045_v41, %v1028_v46  ;;  %v1046_v52 = vsel %vm472_vm6, %v2374_v4, %v986_v48  ;;  %v1450_v4 = vld [vmem:[#allocation9] ss:$0 sm:$0xff] }
 0x18b   : > { %1535 = vmatprep.mubr.msk.f32.mxu0 %vm492_vm8, %v1053_v27 }
 0x18d   : > { %v1030_v29 = vpop.permute.xlu1 %1029  ;;  %v740_v30 = vpop.permute.xlu0 %739 }
 0x18e   : > { %v1054_v31 = vsel %vm481_vm7, %v1046_v52, %v1030_v29  ;;  %v764_v58 = vsel %vm481_vm7, %v756_v28, %v740_v30 }
 0x18f   : > { %1520 = vmatmul.mubr.msk.f32.gmra.mrb[6].mxu1 %vm492_vm8, %v764_v58  ;;  %1536 = vmatmul.mubr.msk.f32.gmra.mrb[6].mxu0 %vm492_vm8, %v1054_v31 }
 0x212   : > { %v1496_v32 = vpop.f32.mrb[0].mxu1 }
 0x213   : > { %v587_v33 = vpop.f32.mrb[1].mxu1 }
 0x222   : > { %v1499_v47 = vpop.f32.mrb[2].mxu1 }
 0x223   : > { %v597_v36 = vpop.f32.mrb[3].mxu1 }
 0x232   : > { %v1528_v2 = vpop.f32.mrb[0].mxu0 }
 0x233   : > { %v1558_v37 = vadd.f32 %v1528_v2, %v1496_v32  ;;  %v1151_v39 = vpop.f32.mrb[1].mxu0 }
 0x234   : > { %v1559_v42 = vadd.f32 %v1151_v39, %v587_v33 }
 0x235   : > { %v1230_v43 = vadd.f32 %v1558_v37, %v1450_v4 }
 0x236   : > { %v1229_v44 = vadd.f32 %v1559_v42, %v1450_v4 }
 0x237   : > { %1238 = vst [vmem:[%s2187_s9 + $0x8] sm:$0xff] %v1230_v43 }
 0x238   : > { %1237 = vst [vmem:[%s2187_s9] sm:$0xff] %v1229_v44 }
 0x242   : > { %v1531_v45 = vpop.f32.mrb[2].mxu0 }
 0x243   : > { %v1560_v49 = vadd.f32 %v1531_v45, %v1499_v47  ;;  %v1161_v50 = vpop.f32.mrb[3].mxu0 }
 0x244   : > { %v1561_v51 = vadd.f32 %v1161_v50, %v597_v36 }
 0x245   : > { %v1232_v53 = vadd.f32 %v1560_v49, %v1450_v4 }
 0x246   : > { %v1231_v60 = vadd.f32 %v1561_v51, %v1450_v4 }
 0x247   : > { %1240 = vst [vmem:[%s2187_s9 + $0x18] sm:$0xff] %v1232_v53 }
 0x248   : > { %1239 = vst [vmem:[%s2187_s9 + $0x10] sm:$0xff] %v1231_v60 }
 0x252   : > { %v1518_v54 = vpop.f32.mrb[4].mxu1  ;;  %v1534_v55 = vpop.f32.mrb[4].mxu0 }
 0x253   : > { %v1562_v56 = vadd.f32 %v1534_v55, %v1518_v54  ;;  %v881_v57 = vpop.f32.mrb[5].mxu1  ;;  %v1171_v59 = vpop.f32.mrb[5].mxu0 }
 0x254   : > { %v1563_v61 = vadd.f32 %v1171_v59, %v881_v57 }
 0x255   : > { %v1234_v62 = vadd.f32 %v1562_v56, %v1450_v4 }
 0x256   : > { %v1233_v63 = vadd.f32 %v1563_v61, %v1450_v4 }
 0x257   : > { %1242 = vst [vmem:[%s2187_s9 + $0x28] sm:$0xff] %v1234_v62 }
 0x258   : > { %1241 = vst [vmem:[%s2187_s9 + $0x20] sm:$0xff] %v1233_v63 }
 0x262   : > { %v1521_v0 = vpop.f32.mrb[6].mxu1  ;;  %v1537_v1 = vpop.f32.mrb[6].mxu0 }
 0x263   : > { %v1564_v3 = vadd.f32 %v1537_v1, %v1521_v0  ;;  %v891_v5 = vpop.f32.mrb[7].mxu1  ;;  %v1181_v6 = vpop.f32.mrb[7].mxu0 }
 0x264   : > { %v1565_v7 = vadd.f32 %v1181_v6, %v891_v5 }
 0x265   : > { %v1236_v8 = vadd.f32 %v1564_v3, %v1450_v4 }
 0x266   : > { %v1235_v9 = vadd.f32 %v1565_v7, %v1450_v4 }
 0x267   : > { %1244 = vst [vmem:[%s2187_s9 + $0x38] sm:$0xff] %v1236_v8 }
 0x268   : > { %1243 = vst [vmem:[%s2187_s9 + $0x30] sm:$0xff] %v1235_v9 }
 0x269   : > { %1803 = shalt.err (!%p1800_p8)
}
 0x26a   : > { %s1804_s20 = scalar_lea.hbm %s2618_s23, 1024  ;;  %s1808_s27 = scalar_lea.hbm %s2691_s3, 8192 }
 0x26b   : > { %p1805_p12 = scmp.ne.s32.totalorder %s2618_s23, %s1804_s20  ;;  %p1809_p10 = scmp.lt.u32.totalorder %s2618_s23, %s2691_s3 }
 0x26c   : > { %p1810_p1 = scmp.lt.u32.totalorder %s1808_s27, %s1804_s20  ;;  %p1812_p3 = scmp.lt.u32.totalorder %s1804_s20, %s2618_s23 }
 0x26d   : > { %p1806_p2 = pnand %p1805_p12, %p2727_p7 }
 0x26e   : > { %p1811_p4 = por %p1810_p1, %p1809_p10 }
 0x26f   : > { %p1807_p6 = pneg %p1806_p2 }
 0x270   : > { %p1813_p13 = por %p1812_p3, %p1811_p4 }
 0x272   : > { %p1814_p9 = pnand %p1813_p13, %p1807_p6 }
 0x274   : > { %1817 = shalt.err (!%p1814_p9)
}
 0x275   : > { %s1928_s26 = smov 128  }
 0x276   : > { %1584 = dma.vmem_to_hbm [thread:$0]  (%p2727_p7), %s2620_s6, 1024, %s2618_s23, %s2626_s18, %s1928_s26, %s1928_s26, %s1926_s4  }
 0x277 PF: > { %s2728_s12 = sld [smem:[#allocation14_spill]]  ;;  %s2729_s29 = sld [smem:[#allocation16_spill]] }
 0x278   : > { %p1606_p11 = scmp.ge.s32.totalorder %s1916_s22, 2 }
 0x27d   : > { %s1277_s1 = sand.u32 1, %s2728_s12   ;;  %p2730_p0 = scmp.ne.s32.totalorder %s2729_s29, 0 }
 0x27e   : > { %s1278_s11 = scalar_lea.sflag [#allocation6], %s1277_s1 }
 0x27f   : > { %p1598_p5 = pnand %p1606_p11, %p2730_p0 }
 0x281   : > { %1871 = dma.done.wait (!%p1598_p5), %s1278_s11, 1024  }
 0x282   : > { %1873 = vsyncadd (!%p1598_p5), %s1278_s11, 4294966272  ;;  %s20_s22 = sadd.s32 1, %s1916_s22   ;;  %s2731_s18 = sld [smem:[#allocation15_spill]] }
 0x283   : > { %p17_p8 = scmp.ge.s32.totalorder %s20_s22, 10   ;;  %s2732_s20 = sld [smem:[#allocation17_spill]] }
 0x284   : > { %s2733_s28 = smov %s2747_s15  ;;  %s2734_s12 = smov %s1880_s13 }
 0x285   : > { %s2735_s13 = smov %s1884_s14  ;;  %s2736_s14 = smov %s2128_s2 }
 0x286   : > { %s2737_s15 = smov %s1892_s16  ;;  %s2738_s16 = smov %s1896_s17 }
 0x287   : > { %s2739_s17 = smov %s2123_s10  ;;  %s2740_s19 = smov %s1912_s21 }
 0x288   : > { %s2741_s21 = smov %s2733_s28  ;;  %19 = sbr.rel (!%p17_p8) target bundleno = 13 (0xd), region = 95 }
 0x28f   :  { %1283 = vsyncpa [#allocation5], 1 }
 0x290   :  { %1285 = vsyncpa [#allocation5 + $0x1], 1 }
 0x291   :  { %1286 = vsyncpa [#allocation8], 1 }
 0x292   :  { %1287 = vsyncpa [#allocation6], 1 }
 0x293   :  { %1289 = vsyncpa [#allocation6 + $0x1], 1 }

</bundles_post_ra>
